<compile_context>
chip_gen: v6e
topology: v6e:2x2x1
jax: 0.10.0
libtpu: 0.0.40
codegen_flags: <defaults>
</compile_context>

<pallas_src>
import functools

import jax
import jax.numpy as jnp
from jax import lax
from jax.experimental import pallas as pl
from jax.experimental.pallas import tpu as pltpu


def _round_up(x, n):
    return ((x + n - 1) // n) * n


def _rotate_kernel(x_ref, w_ref, o_ref, acc_ref):
    # x_ref:   (TM, TK) bf16 in VMEM
    # w_ref:   (TN, TK) bf16 in VMEM (PyTorch (out, in) layout, NOT transposed)
    # o_ref:   (TM, TN) f32 in VMEM
    # acc_ref: (TM, TN) f32 VMEM scratch, persists across the K grid axis.
    @pl.when(pl.program_id(2) == 0)
    def _():
        acc_ref[...] = jnp.zeros_like(acc_ref)

    # Contract x's axis 1 with w's axis 1  ==  x @ w.T, on the MXU, f32 acc.
    acc_ref[...] += lax.dot_general(
        x_ref[...],
        w_ref[...],
        dimension_numbers=(((1,), (1,)), ((), ())),
        preferred_element_type=jnp.float32,
    )

    @pl.when(pl.program_id(2) == pl.num_programs(2) - 1)
    def _():
        o_ref[...] = acc_ref[...].astype(o_ref.dtype)


@functools.partial(jax.jit, static_argnames=("m", "compute_dtype"))
def rotate_subspace(x, weight, m, compute_dtype=jnp.bfloat16):
    """x: (B, d), weight: (d, d) in PyTorch (out, in) layout.

    Returns (B, m, d // m) float32, matching RotateSubspace.forward.
    """
    B, d = x.shape
    assert d % m == 0
    assert weight.shape == (d, d)

    in_itemsize = jnp.dtype(compute_dtype).itemsize

    # ---- Padding: contraction / output-feature dim to a multiple of 128
    # (lane), batch only to a multiple of 8 (sublane, at most 7 extra rows).
    # Zero-padded K/N columns do not change valid results; padded rows/cols
    # are sliced off below.
    d_pad = _round_up(d, 128)
    B_pad = _round_up(B, 8)

    # ---- Tile selection --------------------------------------------------
    # M tile: multiple of 8, never bigger than the sublane-padded batch.
    TM = min(512, B_pad)

    # K tile: full contraction when small, otherwise the largest tile that
    # divides d_pad exactly (no partial, garbage-reading K blocks).
    if d_pad <= 2048:
        TK = d_pad
    else:
        TK = 128
        for cand in (2048, 1024, 512, 256):
            if d_pad % cand == 0:
                TK = cand
                break

    # N tile: multiple of 128 dividing d_pad; prefer >= 2 tiles along this
    # "parallel" axis so both v7x TensorCores get work.
    TN = 128
    for cand in (512, 256, 128):
        if d_pad % cand == 0 and (d_pad // cand >= 2 or d_pad == 128):
            TN = cand
            break

    m_tiles = (B_pad + TM - 1) // TM
    n_tiles = d_pad // TN
    k_tiles = d_pad // TK
    # N outermost, M inner, K (reduction) innermost.
    grid = (n_tiles, m_tiles, k_tiles)

    # ---- Cast + pad operands ----------------------------------------------
    x_c = x.astype(compute_dtype)
    w_c = weight.astype(compute_dtype)
    if (B_pad, d_pad) != (B, d):
        x_c = jnp.pad(x_c, ((0, B_pad - B), (0, d_pad - d)))
    if d_pad != d:
        # TODO(synk): the weight is a parameter -- in a real model pad/cast it
        # once outside the per-call path instead of on every invocation.
        w_c = jnp.pad(w_c, ((0, d_pad - d), (0, d_pad - d)))

    # ---- VMEM budget: actual tile footprint + headroom, capped at 48 MiB so
    # it stays within v7x's 64 MiB physical VMEM.
    tile_vmem = (
        2 * (TM * TK + TN * TK) * in_itemsize  # double-buffered input blocks
        + 2 * TM * TN * 4                      # double-buffered f32 out block
        + TM * TN * 4                          # f32 accumulator scratch
    )
    vmem_limit = int(
        min(48 * 1024 * 1024, max(32 * 1024 * 1024, tile_vmem + 8 * 1024 * 1024))
    )

    # ---- Cost estimate with the real (padded, re-streamed) traffic.
    # When k_tiles == 1 the weight tile is resident across the inner M sweep
    # and is streamed once; otherwise it is re-streamed once per M tile.
    w_hbm = d_pad * d_pad * in_itemsize * (1 if k_tiles == 1 else m_tiles)
    x_hbm = B_pad * d_pad * in_itemsize * n_tiles
    o_hbm = B_pad * d_pad * 4
    cost = pl.CostEstimate(
        flops=2 * B_pad * d_pad * d_pad,
        transcendentals=0,
        bytes_accessed=int(w_hbm + x_hbm + o_hbm),
    )

    out = pl.pallas_call(
        _rotate_kernel,
        out_shape=jax.ShapeDtypeStruct((B_pad, d_pad), jnp.float32),
        grid=grid,
        in_specs=[
            # X tile: varies with the M and K grid axes.
            pl.BlockSpec((TM, TK), lambda j, i, k: (i, k)),
            # Weight tile: varies with N and K only -> stays resident across
            # the whole inner M sweep when the contraction is a single K tile.
            pl.BlockSpec((TN, TK), lambda j, i, k: (j, k)),
        ],
        out_specs=pl.BlockSpec((TM, TN), lambda j, i, k: (i, j)),
        scratch_shapes=[pltpu.VMEM((TM, TN), jnp.float32)],
        compiler_params=pltpu.CompilerParams(
            dimension_semantics=("parallel", "parallel", "arbitrary"),
            vmem_limit_bytes=vmem_limit,
        ),
        cost_estimate=cost,
    )(x_c, w_c)

    # Strip padding, then the view(B, m, -1) from Subpace.forward.
    out = out[:B, :d]
    return out.reshape(B, m, d // m)


if __name__ == "__main__":
    # Small shapes consistent with the module: d divisible by m.
    B, m, d = 2, 4, 32

    key = jax.random.PRNGKey(0)
    kx, kw = jax.random.split(key)
    x = jax.random.normal(kx, (B, d), dtype=jnp.float32)
    # Deterministic weight init (Kaiming-uniform-ish bound like nn.Linear).
    bound = 1.0 / (d ** 0.5)
    weight = jax.random.uniform(
        kw, (d, d), dtype=jnp.float32, minval=-bound, maxval=bound
    )

    y = rotate_subspace(x, weight, m)
    jax.block_until_ready(y)

    assert y.shape == (B, m, d // m)

    # Reference in the same compute precision (bf16 operands, f32 accum).
    y_ref_bf16 = jnp.dot(
        x.astype(jnp.bfloat16),
        weight.astype(jnp.bfloat16).T,
        preferred_element_type=jnp.float32,
    ).reshape(B, m, d // m)
    assert jnp.allclose(y, y_ref_bf16, atol=1e-3, rtol=1e-3)

    # Loose full-precision sanity check (bf16 operands => relaxed tolerance).
    y_ref_f32 = (x @ weight.T).reshape(B, m, d // m)
    assert jnp.allclose(y, y_ref_f32, atol=1e-1, rtol=1e-1)

    print("KERNEL_OK")
</pallas_src>

<mosaic_0001>
module attributes {stable_mosaic.version = 11 : i64} {
  func.func @_rotate_kernel(%arg0: i32, %arg1: i32, %arg2: i32, %arg3: memref<8x128xbf16, #tpu.memory_space<vmem>>, %arg4: memref<128x128xbf16, #tpu.memory_space<vmem>>, %arg5: memref<8x128xf32, #tpu.memory_space<vmem>>, %arg6: memref<8x128xf32, #tpu.memory_space<vmem>>) attributes {dimension_semantics = [#tpu.dimension_semantics<parallel>, #tpu.dimension_semantics<parallel>, #tpu.dimension_semantics<arbitrary>], iteration_bounds = array<i64: 1, 1, 1>, scalar_prefetch = 0 : i64, scratch_operands = 1 : i64, tpu.core_type = #tpu.core_type<tc>, window_params = [{transform_indices = @transform_0, window_bounds = array<i64: 8, 128>}, {transform_indices = @transform_1, window_bounds = array<i64: 128, 128>}, {transform_indices = @transform_2, window_bounds = array<i64: 8, 128>}]} {
    %c0_i32 = arith.constant 0 : i32
    %0 = arith.cmpi eq, %arg2, %c0_i32 : i32
    %1 = arith.extui %0 : i1 to i32
    %c0_i32_0 = arith.constant 0 : i32
    %2 = arith.cmpi ne, %1, %c0_i32_0 : i32
    scf.if %2 {
      %cst_10 = arith.constant 0.000000e+00 : f32
      %12 = vector.broadcast %cst_10 : f32 to vector<8x128xf32>
      %c0_11 = arith.constant 0 : index
      %c0_12 = arith.constant 0 : index
      %13 = vector.load %arg6[%c0_11, %c0_12] : memref<8x128xf32, #tpu.memory_space<vmem>>, vector<8x128xf32>
      tpu.vector_store %arg6[%c0_11, %c0_12], %12 {strides = array<i32>} : memref<8x128xf32, #tpu.memory_space<vmem>>, vector<8x128xf32>,
    } else {
    }
    %c0 = arith.constant 0 : index
    %c0_1 = arith.constant 0 : index
    %3 = vector.load %arg6[%c0, %c0_1] : memref<8x128xf32, #tpu.memory_space<vmem>>, vector<8x128xf32>
    %c0_2 = arith.constant 0 : index
    %c0_3 = arith.constant 0 : index
    %4 = vector.load %arg3[%c0_2, %c0_3] : memref<8x128xbf16, #tpu.memory_space<vmem>>, vector<8x128xbf16>
    %c0_4 = arith.constant 0 : index
    %c0_5 = arith.constant 0 : index
    %5 = vector.load %arg4[%c0_4, %c0_5] : memref<128x128xbf16, #tpu.memory_space<vmem>>, vector<128x128xbf16>
    %cst = arith.constant dense<0.000000e+00> : vector<8x128xf32>
    %6 = tpu.matmul %4, %5, %cst {dimension_numbers = #tpu.dot_dimension_numbers<[1], [1], [0], [0], [0, 0, 1, 0], [], []>} : vector<8x128xbf16>, vector<128x128xbf16>, vector<8x128xf32> -> vector<8x128xf32>
    %7 = arith.addf %3, %6 : vector<8x128xf32>
    %c0_6 = arith.constant 0 : index
    %c0_7 = arith.constant 0 : index
    %8 = vector.load %arg6[%c0_6, %c0_7] : memref<8x128xf32, #tpu.memory_space<vmem>>, vector<8x128xf32>
    tpu.vector_store %arg6[%c0_6, %c0_7], %7 {strides = array<i32>} : memref<8x128xf32, #tpu.memory_space<vmem>>, vector<8x128xf32>,
    %c0_i32_8 = arith.constant 0 : i32
    %9 = arith.cmpi eq, %arg2, %c0_i32_8 : i32
    %10 = arith.extui %9 : i1 to i32
    %c0_i32_9 = arith.constant 0 : i32
    %11 = arith.cmpi ne, %10, %c0_i32_9 : i32
    scf.if %11 {
      %c0_10 = arith.constant 0 : index
      %c0_11 = arith.constant 0 : index
      %12 = vector.load %arg6[%c0_10, %c0_11] : memref<8x128xf32, #tpu.memory_space<vmem>>, vector<8x128xf32>
      %c0_12 = arith.constant 0 : index
      %c0_13 = arith.constant 0 : index
      %13 = vector.load %arg5[%c0_12, %c0_13] : memref<8x128xf32, #tpu.memory_space<vmem>>, vector<8x128xf32>
      tpu.vector_store %arg5[%c0_12, %c0_13], %12 {strides = array<i32>} : memref<8x128xf32, #tpu.memory_space<vmem>>, vector<8x128xf32>,
    } else {
    }
    return
  }
  func.func @transform_0(%arg0: i32, %arg1: i32, %arg2: i32) -> (i32, i32) {
    %c0_i32 = arith.constant 0 : i32
    return %arg1, %arg2 : i32, i32
  }
  func.func @transform_1(%arg0: i32, %arg1: i32, %arg2: i32) -> (i32, i32) {
    %c0_i32 = arith.constant 0 : i32
    return %arg0, %arg2 : i32, i32
  }
  func.func @transform_2(%arg0: i32, %arg1: i32, %arg2: i32) -> (i32, i32) {
    %c0_i32 = arith.constant 0 : i32
    return %arg1, %arg0 : i32, i32
  }
}

</mosaic_0001>

<bundles_post_ra>
// kernel: rotate_subspace.1
= control target key start
LH: loop header
LB: loop body
LE: loop exit
PB: predicated region body
PF: predicated region fallthrough
CT: control target
= control target key end

     0   :  { %v181_v0 = vmov 0.0   ;;  %vm182_vm0 = vmmov 0   ;;  %s228_s1 = inlined_call_operand.vmem [shape: bf16[128,128], index: 1, kind: input, shape index: {}]   ;;  %s229_s0 = inlined_call_operand.vmem [shape: bf16[8,128], index: 0, kind: input, shape index: {}]   ;;  %s230_s2 = inlined_call_operand.vmem [shape: f32[8,128], index: 2, kind: output, shape index: {}]  }
   0x1   :  { %151 = vmatprep.subr.bf16.mxu0 %v181_v0  ;;  %v173_v1 = vld [vmem:[%s228_s1 + $0x38] sm:$0xff]   ;;  %167 = vmatprep.mubr.msk.bf16.mxu0 %vm182_vm0, %v181_v0  ;;  %v174_v2 = vld [vmem:[%s228_s1 + $0x30] sm:$0xff]   ;;  %v175_v3 = vld [vmem:[%s228_s1 + $0x28] sm:$0xff]  }
   0x2   :  { %152 = vmatpush3.bf16.xpose.msra.mxu0 %v173_v1  ;;  %v176_v4 = vld [vmem:[%s228_s1 + $0x20] sm:$0xff]   ;;  %v177_v5 = vld [vmem:[%s228_s1 + $0x18] sm:$0xff]   ;;  %v178_v6 = vld [vmem:[%s228_s1 + $0x10] sm:$0xff]  }
   0x3   :  { %153 = vmatprep.subr.bf16.mxu0 %v181_v0  ;;  %v179_v7 = vld [vmem:[%s228_s1 + $0x8] sm:$0xff]   ;;  %v180_v8 = vld [vmem:[%s228_s1] sm:$0xff]  }
   0x4   :  { %v18_v9 = vld [vmem:[%s229_s0] sm:$0xf] }
   0xa   :  { %154 = vmatpush3.bf16.xpose.msra.mxu0 %v174_v2 }
   0xb   :  { %155 = vmatprep.subr.bf16.mxu0 %v181_v0 }
  0x12   :  { %156 = vmatpush3.bf16.xpose.msra.mxu0 %v175_v3 }
  0x13   :  { %157 = vmatprep.subr.bf16.mxu0 %v181_v0 }
  0x1a   :  { %158 = vmatpush3.bf16.xpose.msra.mxu0 %v176_v4 }
  0x1b   :  { %159 = vmatprep.subr.bf16.mxu0 %v181_v0 }
  0x22   :  { %160 = vmatpush3.bf16.xpose.msra.mxu0 %v177_v5 }
  0x23   :  { %161 = vmatprep.subr.bf16.mxu0 %v181_v0 }
  0x2a   :  { %162 = vmatpush3.bf16.xpose.msra.mxu0 %v178_v6 }
  0x2b   :  { %163 = vmatprep.subr.bf16.mxu0 %v181_v0 }
  0x32   :  { %164 = vmatpush3.bf16.xpose.msra.mxu0 %v179_v7 }
  0x33   :  { %165 = vmatprep.subr.bf16.mxu0 %v181_v0 }
  0x3a   :  { %166 = vmatpush3.bf16.xpose.msra.mxu0 %v180_v8 }
  0x41   :  { %168 = vmatmul.mubr.bf16.vlgmr.msra.gmra.mxu0 %v18_v9 }
 0x101   :  { %v117_v10 = vpop.f32.mrf.mxu0 }
 0x102   :  { %129 = vst [vmem:[%s230_s2] sm:$0xff] %v117_v10 }
 0x103   :  { %v169_v11 = vpop.f32.mrf.mxu0 }
 0x105   :  { %v120_v12 = vpop.f32.mrf.mxu0 }
 0x107   :  { %v170_v13 = vpop.f32.mrf.mxu0 }

</bundles_post_ra>
